<compile_context>
chip_gen: v7x
topology: tpu7x:2x2x1
jax: 0.10.0
libtpu: 0.0.40
codegen_flags: <defaults>
</compile_context>

<pallas_src>
import functools

import jax
import jax.numpy as jnp
from jax.experimental import pallas as pl
from jax.experimental.pallas import tpu as pltpu

EPS_BN = 1e-5
LRELU_SLOPE = 0.2


# ------------------------------ in-kernel helpers --------------------------- #

def _act(v, scale, shift):
    y = v * scale + shift
    return jnp.where(y >= 0.0, y, LRELU_SLOPE * y)


def _build_window(xt, xc, xb, scale, shift, top_m, bot_m, tile_h, w, cin):
    """Flattened ((tile_h+2)*W, C) activation window with zeroed halo rows at the
    image top/bottom.  Only row-granular pieces (aligned when W % 8 == 0)."""
    top = (_act(xt, scale, shift) * top_m).reshape(w, cin)
    core = _act(xc, scale, shift).reshape(tile_h * w, cin)
    bot = (_act(xb, scale, shift) * bot_m).reshape(w, cin)
    return jnp.concatenate([top, core, bot], axis=0)


def _conv3x3_acc(win, keep_l, keep_r, w_ref, acc, *, tile_h, w, mxu_dtype):
    """acc += 3x3 conv: 3 kx-shifted slabs (pltpu.roll on the sublane axis + an
    edge-column mask) x 3 row-granular ky slices => 9 aligned
    (tile_h*W, cin) x (cin, cout) MXU matmuls, no unaligned patch copies."""
    nrows = win.shape[0]
    for kx in range(3):
        if kx == 0:            # left neighbour: slab[r] = win[r-1], zero at x == 0
            slab = pltpu.roll(win, shift=1, axis=0) * keep_l
        elif kx == 1:
            slab = win
        else:                  # right neighbour: slab[r] = win[r+1], zero at x == W-1
            slab = pltpu.roll(win, shift=nrows - 1, axis=0) * keep_r
        slab = slab.astype(mxu_dtype)
        for ky in range(3):
            patch = slab[ky * w:(ky + tile_h) * w]       # aligned sublane slice
            acc = acc + jnp.dot(patch, w_ref[ky * 3 + kx],
                                preferred_element_type=jnp.float32)
    return acc


# ----------------------------- Pallas kernels ------------------------------ #

def _stats_kernel(x_ref, part_ref, *, tile_h, w, c):
    """Per-channel [sum; sum_sq] partial of one (tile_h, W, C) tile. Partials
    are written per (batch, tile) block and reduced in the wrapper, so both
    grid axes stay 'parallel' (megacore-friendly, no accumulation race)."""
    x = x_ref[...].reshape(tile_h * w, c)
    s = jnp.sum(x, axis=0, keepdims=True)
    sq = jnp.sum(x * x, axis=0, keepdims=True)
    part_ref[...] = jnp.concatenate([s, sq], axis=0)


def _conv0_kernel(xc_ref, xt_ref, xb_ref, scale_ref, shift_ref, w_ref, b_ref,
                  ml_ref, mr_ref, dxs_ref, stat_ref, *,
                  tile_h, w, cin, cout, n_tiles, mxu_dtype):
    """dxs = conv3x3(leaky_relu(x*scale+shift)) on one H-tile + fused per-tile
    partial batch stats of dxs (for bn_1_0)."""
    t = pl.program_id(1)
    top_m = (t > 0).astype(jnp.float32)              # zero pad at image top
    bot_m = (t < n_tiles - 1).astype(jnp.float32)    # zero pad at image bottom
    win = _build_window(xt_ref[...], xc_ref[...], xb_ref[...],
                        scale_ref[...], shift_ref[...], top_m, bot_m,
                        tile_h, w, cin)
    acc = jnp.broadcast_to(b_ref[...], (tile_h * w, cout))  # bias-initialized acc
    acc = _conv3x3_acc(win, ml_ref[...], mr_ref[...], w_ref, acc,
                       tile_h=tile_h, w=w, mxu_dtype=mxu_dtype)
    dxs_ref[...] = acc.reshape(tile_h, w, cout).astype(dxs_ref.dtype)

    s = jnp.sum(acc, axis=0, keepdims=True)
    sq = jnp.sum(acc * acc, axis=0, keepdims=True)
    stat_ref[...] = jnp.concatenate([s, sq], axis=0)


def _conv1_kernel(*refs, tile_h, w, cin, cout, cin_x, n_tiles,
                  learned_shortcut, mxu_dtype):
    """out = conv3x3(leaky_relu(dxs*scale+shift)) + shortcut on one H-tile.
    Shortcut is either (x*scale_s+shift_s) @ W_1x1 (learned) or x (identity)."""
    if learned_shortcut:
        (dc_ref, dt_ref, db_ref, xc_ref, scale_ref, shift_ref, w_ref, b_ref,
         ml_ref, mr_ref, ss_ref, sh_ref, ws_ref, o_ref) = refs
    else:
        (dc_ref, dt_ref, db_ref, xc_ref, scale_ref, shift_ref, w_ref, b_ref,
         ml_ref, mr_ref, o_ref) = refs

    t = pl.program_id(1)
    top_m = (t > 0).astype(jnp.float32)
    bot_m = (t < n_tiles - 1).astype(jnp.float32)
    win = _build_window(dt_ref[...], dc_ref[...], db_ref[...],
                        scale_ref[...], shift_ref[...], top_m, bot_m,
                        tile_h, w, cin)
    acc = jnp.broadcast_to(b_ref[...], (tile_h * w, cout))
    acc = _conv3x3_acc(win, ml_ref[...], mr_ref[...], w_ref, acc,
                       tile_h=tile_h, w=w, mxu_dtype=mxu_dtype)

    if learned_shortcut:
        xs = (xc_ref[...] * ss_ref[...] + sh_ref[...]).reshape(tile_h * w, cin_x)
        acc = acc + jnp.dot(xs.astype(mxu_dtype), ws_ref[...],
                            preferred_element_type=jnp.float32)
    else:
        # Identity shortcut (fin == fout, stride == 1): plain residual add,
        # no 1x1 matmul / affine / extra parameter DMAs.
        acc = acc + xc_ref[...].astype(jnp.float32).reshape(tile_h * w, cout)

    o_ref[...] = acc.reshape(tile_h, w, cout).astype(o_ref.dtype)


# ------------------------------ sizing helpers ------------------------------ #

def _default_vmem_limit():
    cap = None
    try:
        cap = getattr(pltpu.get_tpu_info(), "vmem_capacity_bytes", None)
    except Exception:
        cap = None
    if not cap:
        cap = 64 * 1024 * 1024          # conservative fallback (v7x per-TC size)
    return int(min(cap * 3 // 4, 100 * 1024 * 1024))


def _pick_tile_h(h, fixed_bytes, per_row_bytes, budget):
    """Largest divisor of H whose estimated VMEM footprint fits the budget."""
    best = 1
    for th in range(1, h + 1):
        if h % th == 0 and fixed_bytes + th * per_row_bytes <= budget:
            best = th
    return best


def _edge_masks(tile_h, w):
    """Keep-masks for the left/right-shifted slabs (zero the wrapped column)."""
    col = jnp.arange((tile_h + 2) * w, dtype=jnp.int32) % w
    keep_l = (col != 0).astype(jnp.float32).reshape(-1, 1)
    keep_r = (col != (w - 1)).astype(jnp.float32).reshape(-1, 1)
    return keep_l, keep_r


def _full_spec(a):
    return pl.BlockSpec(a.shape, lambda i, t: (0,) * a.ndim)


# ------------------------------ pallas_call wrappers ------------------------ #

def _batch_stats(x, tile_h, vmem_limit):
    n, h, w, c = x.shape
    n_tiles = h // tile_h
    part = pl.pallas_call(
        functools.partial(_stats_kernel, tile_h=tile_h, w=w, c=c),
        grid=(n, n_tiles),
        in_specs=[pl.BlockSpec((None, tile_h, w, c), lambda i, t: (i, t, 0, 0))],
        out_specs=pl.BlockSpec((None, None, 2, c), lambda i, t: (i, t, 0, 0)),
        out_shape=jax.ShapeDtypeStruct((n, n_tiles, 2, c), jnp.float32),
        compiler_params=pltpu.CompilerParams(
            dimension_semantics=("parallel", "parallel"),
            vmem_limit_bytes=vmem_limit),
    )(x)
    tot = jnp.sum(part, axis=(0, 1))
    cnt = float(n * h * w)
    mean = tot[0] / cnt
    # TODO(synk): single-pass E[x^2]-E[x]^2 (clamped) loses precision vs a
    #             two-pass variance when |mean| >> std on very large tensors.
    var = jnp.maximum(tot[1] / cnt - mean * mean, 0.0)
    return mean, var


def _conv0(x, scale0, shift0, w_taps, bias, mask_l, mask_r, tile_h, vmem_limit,
           mxu_dtype, dxs_dtype):
    n, h, w, cin = x.shape
    cout = w_taps.shape[-1]
    n_tiles = h // tile_h
    core = pl.BlockSpec((None, tile_h, w, cin), lambda i, t: (i, t, 0, 0))
    # 1-row halos: block size 1 along H => block index == row index (clamped;
    # the kernel zeroes them at the image border via top_m/bot_m).
    top = pl.BlockSpec((None, 1, w, cin),
                       lambda i, t: (i, jnp.maximum(t * tile_h - 1, 0), 0, 0))
    bot = pl.BlockSpec((None, 1, w, cin),
                       lambda i, t: (i, jnp.minimum(t * tile_h + tile_h, h - 1), 0, 0))
    dxs, stat = pl.pallas_call(
        functools.partial(_conv0_kernel, tile_h=tile_h, w=w, cin=cin, cout=cout,
                          n_tiles=n_tiles, mxu_dtype=mxu_dtype),
        grid=(n, n_tiles),
        in_specs=[core, top, bot,
                  _full_spec(scale0), _full_spec(shift0), _full_spec(w_taps),
                  _full_spec(bias), _full_spec(mask_l), _full_spec(mask_r)],
        out_specs=[pl.BlockSpec((None, tile_h, w, cout), lambda i, t: (i, t, 0, 0)),
                   pl.BlockSpec((None, None, 2, cout), lambda i, t: (i, t, 0, 0))],
        out_shape=[jax.ShapeDtypeStruct((n, h, w, cout), dxs_dtype),
                   jax.ShapeDtypeStruct((n, n_tiles, 2, cout), jnp.float32)],
        compiler_params=pltpu.CompilerParams(
            dimension_semantics=("parallel", "parallel"),
            vmem_limit_bytes=vmem_limit),
    )(x, x, x, scale0, shift0, w_taps, bias, mask_l, mask_r)
    return dxs, stat


def _conv1(d, x, scale1, shift1, w_taps, bias, mask_l, mask_r, shortcut,
           tile_h, vmem_limit, mxu_dtype):
    n, h, w, fhid = d.shape
    fin = x.shape[-1]
    fout = w_taps.shape[-1]
    n_tiles = h // tile_h
    d_core = pl.BlockSpec((None, tile_h, w, fhid), lambda i, t: (i, t, 0, 0))
    d_top = pl.BlockSpec((None, 1, w, fhid),
                         lambda i, t: (i, jnp.maximum(t * tile_h - 1, 0), 0, 0))
    d_bot = pl.BlockSpec((None, 1, w, fhid),
                         lambda i, t: (i, jnp.minimum(t * tile_h + tile_h, h - 1), 0, 0))
    x_core = pl.BlockSpec((None, tile_h, w, fin), lambda i, t: (i, t, 0, 0))

    inputs = [d, d, d, x, scale1, shift1, w_taps, bias, mask_l, mask_r]
    in_specs = [d_core, d_top, d_bot, x_core,
                _full_spec(scale1), _full_spec(shift1), _full_spec(w_taps),
                _full_spec(bias), _full_spec(mask_l), _full_spec(mask_r)]
    learned = shortcut is not None
    if learned:
        scale_s, shift_s, ws_t = shortcut
        inputs += [scale_s, shift_s, ws_t]
        in_specs += [_full_spec(scale_s), _full_spec(shift_s), _full_spec(ws_t)]

    kern = functools.partial(_conv1_kernel, tile_h=tile_h, w=w, cin=fhid,
                             cout=fout, cin_x=fin, n_tiles=n_tiles,
                             learned_shortcut=learned, mxu_dtype=mxu_dtype)
    return pl.pallas_call(
        kern,
        grid=(n, n_tiles),
        in_specs=in_specs,
        out_specs=pl.BlockSpec((None, tile_h, w, fout), lambda i, t: (i, t, 0, 0)),
        out_shape=jax.ShapeDtypeStruct((n, h, w, fout), jnp.float32),
        compiler_params=pltpu.CompilerParams(
            dimension_semantics=("parallel", "parallel"),
            vmem_limit_bytes=vmem_limit),
    )(*inputs)


# ------------------------------ parameter glue ------------------------------ #

def _l2norm(v, eps=1e-12):
    return v / (jnp.sqrt(jnp.sum(v * v)) + eps)


def _spectral_norm(w, u):
    """One power iteration (training-mode torch.nn.utils.spectral_norm), dim=0."""
    w_mat = w.reshape(w.shape[0], -1)
    v = _l2norm(w_mat.T @ u)
    u_new = _l2norm(w_mat @ v)
    sigma = jnp.dot(u_new, w_mat @ v)
    return w / sigma


def init_params(key, fin, fout):
    fhid = min(fin * 3, fout)
    ks = jax.random.split(key, 14)
    p = {}
    p['w0'] = 0.2 * jax.random.normal(ks[0], (fhid, fin, 3, 3), jnp.float32)
    p['b0'] = 0.1 * jax.random.normal(ks[1], (fhid,), jnp.float32)
    p['w1'] = 0.2 * jax.random.normal(ks[2], (fout, fhid, 3, 3), jnp.float32)
    p['b1'] = 0.1 * jax.random.normal(ks[3], (fout,), jnp.float32)
    p['ws'] = 0.2 * jax.random.normal(ks[4], (fout, fin, 1, 1), jnp.float32)  # bias=False
    p['u0'] = _l2norm(jax.random.normal(ks[5], (fhid,), jnp.float32))
    p['u1'] = _l2norm(jax.random.normal(ks[6], (fout,), jnp.float32))
    p['us'] = _l2norm(jax.random.normal(ks[7], (fout,), jnp.float32))
    p['g0'] = 1.0 + 0.1 * jax.random.normal(ks[8], (fin,), jnp.float32)
    p['be0'] = 0.1 * jax.random.normal(ks[9], (fin,), jnp.float32)
    p['g1'] = 1.0 + 0.1 * jax.random.normal(ks[10], (fhid,), jnp.float32)
    p['be1'] = 0.1 * jax.random.normal(ks[11], (fhid,), jnp.float32)
    p['gs'] = 1.0 + 0.1 * jax.random.normal(ks[12], (fin,), jnp.float32)
    p['bes'] = 0.1 * jax.random.normal(ks[13], (fin,), jnp.float32)
    return p


# ------------------------------- forward pass ------------------------------- #

def spade_resnet_block_concat(x_nchw, p, *, tile_h=None, use_bf16_mxu=False,
                              dxs_dtype=jnp.float32):
    # NCHW in (PyTorch convention) -> NHWC internally -> NCHW out.
    x = jnp.transpose(x_nchw, (0, 2, 3, 1)).astype(jnp.float32)
    N, H, W, fin = x.shape
    fhid = p['w0'].shape[0]
    fout = p['w1'].shape[0]
    learned_shortcut = fin != fout
    mxu_dtype = jnp.bfloat16 if use_bf16_mxu else jnp.float32
    wbytes = 2 if use_bf16_mxu else 4

    vmem_limit = _default_vmem_limit()
    budget = int(vmem_limit * 0.55)
    if tile_h is None:
        th_s = _pick_tile_h(H, 0, 2 * 4 * W * fin, budget)
        th0 = _pick_tile_h(H,
                           2 * 9 * fin * fhid * wbytes + 8 * W * fin * 4,
                           4 * W * (5 * fin + 3 * fhid), budget)
        th1 = _pick_tile_h(H,
                           2 * 9 * fhid * fout * wbytes + 8 * W * fhid * 4
                           + 2 * fin * fout * wbytes,
                           4 * W * (5 * fhid + 3 * fout + 3 * fin), budget)
    else:
        assert H % tile_h == 0, "tile_h must divide H"
        th_s = th0 = th1 = tile_h

    # Spectral-norm'd conv weights laid out as (tap, cin, cout).
    w0 = _spectral_norm(p['w0'], p['u0'])
    w1 = _spectral_norm(p['w1'], p['u1'])
    w0_t = jnp.transpose(w0, (2, 3, 1, 0)).reshape(9, fin, fhid).astype(mxu_dtype)
    w1_t = jnp.transpose(w1, (2, 3, 1, 0)).reshape(9, fhid, fout).astype(mxu_dtype)
    b0 = p['b0'].reshape(1, fhid).astype(jnp.float32)
    b1 = p['b1'].reshape(1, fout).astype(jnp.float32)

    # bn_0_0 and bn_s both normalize x -> identical batch statistics.
    mean_x, var_x = _batch_stats(x, th_s, vmem_limit)
    inv_x = 1.0 / jnp.sqrt(var_x + EPS_BN)
    scale0 = (p['g0'] * inv_x).reshape(1, fin)
    shift0 = (p['be0'] - mean_x * p['g0'] * inv_x).reshape(1, fin)

    # conv_0(actvn(bn_0_0(x))) with dxs batch-stats fused into the same kernel.
    ml0, mr0 = _edge_masks(th0, W)
    dxs, stat_d = _conv0(x, scale0, shift0, w0_t, b0, ml0, mr0, th0,
                         vmem_limit, mxu_dtype, dxs_dtype)

    cnt = float(N * H * W)
    tot_d = jnp.sum(stat_d, axis=(0, 1))
    mean_h = tot_d[0] / cnt
    var_h = jnp.maximum(tot_d[1] / cnt - mean_h * mean_h, 0.0)
    inv_h = 1.0 / jnp.sqrt(var_h + EPS_BN)
    scale1 = (p['g1'] * inv_h).reshape(1, fhid)
    shift1 = (p['be1'] - mean_h * p['g1'] * inv_h).reshape(1, fhid)

    if learned_shortcut:
        ws = _spectral_norm(p['ws'], p['us'])
        ws_t = ws[:, :, 0, 0].T.astype(mxu_dtype)          # (fin, fout)
        scale_s = (p['gs'] * inv_x).reshape(1, fin)
        shift_s = (p['bes'] - mean_x * p['gs'] * inv_x).reshape(1, fin)
        shortcut = (scale_s, shift_s, ws_t)
    else:
        shortcut = None                                     # identity residual add

    # conv_1(actvn(bn_1_0(dxs))) + shortcut, all fused in one kernel.
    ml1, mr1 = _edge_masks(th1, W)
    out = _conv1(dxs, x, scale1, shift1, w1_t, b1, ml1, mr1, shortcut, th1,
                 vmem_limit, mxu_dtype)
    return jnp.transpose(out, (0, 3, 1, 2))


# ----------------------------- pure-JAX reference --------------------------- #

def reference_forward(x_nchw, p):
    fin = p['w0'].shape[1]
    fout = p['w1'].shape[0]
    learned_shortcut = fin != fout

    def bn(x, g, b):
        mean = jnp.mean(x, axis=(0, 2, 3), keepdims=True)
        var = jnp.mean(jnp.square(x - mean), axis=(0, 2, 3), keepdims=True)
        return ((x - mean) / jnp.sqrt(var + EPS_BN) * g.reshape(1, -1, 1, 1)
                + b.reshape(1, -1, 1, 1))

    def lrelu(x):
        return jnp.where(x >= 0, x, LRELU_SLOPE * x)

    def conv(x, w, b=None, pad=1):
        y = jax.lax.conv_general_dilated(x, w, (1, 1), [(pad, pad), (pad, pad)],
                                         dimension_numbers=('NCHW', 'OIHW', 'NCHW'))
        if b is not None:
            y = y + b.reshape(1, -1, 1, 1)
        return y

    w0 = _spectral_norm(p['w0'], p['u0'])
    w1 = _spectral_norm(p['w1'], p['u1'])
    x = x_nchw.astype(jnp.float32)
    if learned_shortcut:
        ws = _spectral_norm(p['ws'], p['us'])
        x_s = conv(bn(x, p['gs'], p['bes']), ws, None, pad=0)
    else:
        x_s = x                                             # identity shortcut
    dxs = conv(lrelu(bn(x, p['g0'], p['be0'])), w0, p['b0'], pad=1)
    out = conv(lrelu(bn(dxs, p['g1'], p['be1'])), w1, p['b1'], pad=1)
    return x_s + out


if __name__ == "__main__":
    key = jax.random.PRNGKey(0)
    kx1, kp1, kx2, kp2 = jax.random.split(key, 4)

    # Case 1: learned shortcut (fin != fout), explicit tile_h=8 -> 2 H-tiles per
    # image, exercising both interior halos and the zero image border.
    N, fin, fout, H, W = 2, 4, 8, 16, 16                   # fhidden = min(3*fin, fout) = 8
    x1 = jax.random.normal(kx1, (N, fin, H, W), jnp.float32)
    p1 = init_params(kp1, fin, fout)
    out1 = jax.block_until_ready(spade_resnet_block_concat(x1, p1, tile_h=8))
    ref1 = reference_forward(x1, p1)
    assert out1.shape == (N, fout, H, W), out1.shape
    err1 = float(jnp.max(jnp.abs(out1 - ref1)))
    assert jnp.allclose(out1, ref1, rtol=1e-3, atol=1e-3), err1

    # Case 2: identity shortcut (fin == fout), auto tile_h / VMEM sizing.
    fin2 = fout2 = 8
    x2 = jax.random.normal(kx2, (N, fin2, H, W), jnp.float32)
    p2 = init_params(kp2, fin2, fout2)
    out2 = jax.block_until_ready(spade_resnet_block_concat(x2, p2))
    ref2 = reference_forward(x2, p2)
    assert out2.shape == (N, fout2, H, W), out2.shape
    err2 = float(jnp.max(jnp.abs(out2 - ref2)))
    assert jnp.allclose(out2, ref2, rtol=1e-3, atol=1e-3), err2

    # Case 3: bf16 MXU + bf16 dxs intermediate path (v6e/v7x perf mode); looser
    # tolerance since products/intermediate are rounded to bf16.
    out3 = jax.block_until_ready(
        spade_resnet_block_concat(x1, p1, tile_h=8, use_bf16_mxu=True,
                                  dxs_dtype=jnp.bfloat16))
    err3 = float(jnp.max(jnp.abs(out3 - ref1)))
    assert jnp.allclose(out3, ref1, rtol=5e-2, atol=1e-1), err3

    print("KERNEL_OK")
</pallas_src>

<mosaic_0001>
module attributes {stable_mosaic.version = 11 : i64} {
  func.func @_stats_kernel(%arg0: i32, %arg1: i32, %arg2: memref<1x8x16x4xf32, #tpu.memory_space<vmem>>, %arg3: memref<1x1x2x4xf32, #tpu.memory_space<vmem>>) attributes {dimension_semantics = [#tpu.dimension_semantics<parallel>, #tpu.dimension_semantics<parallel>], iteration_bounds = array<i64: 2, 2>, scalar_prefetch = 0 : i64, scratch_operands = 0 : i64, tpu.core_type = #tpu.core_type<tc>, window_params = [{transform_indices = @transform_0, window_bounds = array<i64: 1, 8, 16, 4>}, {transform_indices = @transform_1, window_bounds = array<i64: 1, 1, 2, 4>}]} {
    %c0 = arith.constant 0 : index
    %c0_0 = arith.constant 0 : index
    %c0_1 = arith.constant 0 : index
    %c0_2 = arith.constant 0 : index
    %0 = vector.load %arg2[%c0, %c0_0, %c0_1, %c0_2] : memref<1x8x16x4xf32, #tpu.memory_space<vmem>>, vector<1x8x16x4xf32>
    %1 = vector.shape_cast %0 : vector<1x8x16x4xf32> to vector<8x16x4xf32>
    %2 = vector.shape_cast %1 : vector<8x16x4xf32> to vector<128x4xf32>
    %cst = arith.constant dense<0.000000e+00> : vector<4xf32>
    %3 = vector.multi_reduction <add>, %2, %cst [0] : vector<128x4xf32> to vector<4xf32>
    %4 = vector.shape_cast %3 : vector<4xf32> to vector<1x4xf32>
    %5 = arith.mulf %2, %2 : vector<128x4xf32>
    %cst_3 = arith.constant dense<0.000000e+00> : vector<4xf32>
    %6 = vector.multi_reduction <add>, %5, %cst_3 [0] : vector<128x4xf32> to vector<4xf32>
    %7 = vector.shape_cast %6 : vector<4xf32> to vector<1x4xf32>
    %8 = tpu.concatenate %4, %7 in 0 : vector<1x4xf32>, vector<1x4xf32> -> vector<2x4xf32>
    %c0_4 = arith.constant 0 : index
    %c0_5 = arith.constant 0 : index
    %c0_6 = arith.constant 0 : index
    %c0_7 = arith.constant 0 : index
    %9 = vector.load %arg3[%c0_4, %c0_5, %c0_6, %c0_7] : memref<1x1x2x4xf32, #tpu.memory_space<vmem>>, vector<1x1x2x4xf32>
    %10 = vector.shape_cast %9 : vector<1x1x2x4xf32> to vector<2x4xf32>
    %11 = vector.shape_cast %8 : vector<2x4xf32> to vector<1x1x2x4xf32>
    tpu.vector_store %arg3[%c0_4, %c0_5, %c0_6, %c0_7], %11 {strides = array<i32>} : memref<1x1x2x4xf32, #tpu.memory_space<vmem>>, vector<1x1x2x4xf32>,
    return
  }
  func.func @transform_0(%arg0: i32, %arg1: i32) -> (i32, i32, i32, i32) {
    %c0_i32 = arith.constant 0 : i32
    %c0_i32_0 = arith.constant 0 : i32
    %c0_i32_1 = arith.constant 0 : i32
    return %arg0, %arg1, %c0_i32, %c0_i32_0 : i32, i32, i32, i32
  }
  func.func @transform_1(%arg0: i32, %arg1: i32) -> (i32, i32, i32, i32) {
    %c0_i32 = arith.constant 0 : i32
    %c0_i32_0 = arith.constant 0 : i32
    %c0_i32_1 = arith.constant 0 : i32
    return %arg0, %arg1, %c0_i32, %c0_i32_0 : i32, i32, i32, i32
  }
}

</mosaic_0001>

<bundles_post_ra>
// kernel: tpu_custom_call.1
= control target key start
LH: loop header
LB: loop body
LE: loop exit
PB: predicated region body
PF: predicated region fallthrough
CT: control target
= control target key end

     0   :  { %6 = vsyncpa [#allocation3], 0  ;;  %s735_s0 = inlined_call_operand.vmem [shape: f32[2,16,16,4], index: 0, kind: input, shape index: {}]   ;;  %s736_s1 = inlined_call_operand.hbm [shape: f32[2,2,2,4], index: 1, kind: output, shape index: {}]  }
   0x1   :  { %8 = vsyncpa [#allocation3 + $0x1], 0  ;;  %s549_s6 = smov 0   ;;  %s551_s7 = smov 0  }
   0x2   :  { %s553_s8 = smov 0   ;;  %s555_s9 = smov 0  }
   0x3   :  { %s557_s10 = smov 0   ;;  %s559_s11 = smov 0  }
   0x4   :  { %s561_s12 = smov 0   ;;  %s563_s13 = smov 0  }
   0x5 LB: > { %s356_s14 = sadd.s32 4294967295, %s536_s13   ;;  %s357_s15 = sadd.s32 4294967294, %s536_s13   ;;  %s536_s13 = sphi %s563_s13, %s14_s13   ;;  %s532_s12 = sphi %s561_s12, %s745_s12   ;;  %s528_s11 = sphi %s559_s11, %s744_s11   ;;  %s524_s10 = sphi %s557_s10, %s743_s10   ;;  %s520_s9 = sphi %s555_s9, %s742_s9   ;;  %s516_s8 = sphi %s553_s8, %s741_s8   ;;  %s512_s7 = sphi %s551_s7, %s740_s7   ;;  %s508_s6 = sphi %s549_s6, %s739_s6  }
   0x6   : > { %s23_s16 = sadd.s32 1, %s528_s11  ;;  %s26_s17 = sadd.s32 1, %s532_s12 }
   0x7   : > { %p24_p0 = scmp.ge.s32.totalorder %s23_s16, 2  ;;  %p73_p1 = scmp.ne.s32.totalorder %s516_s8, %s512_s7 }
   0x8   : > { %p74_p2 = scmp.eq.s32.totalorder %s356_s14, 3  ;;  %p79_p5 = scmp.ne.s32.totalorder %s512_s7, %s508_s6 }
   0x9   : > { %s747_s16 = smov (%p24_p0, %s23_s16), 0  ;;  %s749_s17 = smov (!%p24_p0, %s26_s17), %s532_s12 }
   0xa   : > { %s59_s18 = ssub.s32 %s528_s11, %s747_s16  ;;  %p600_p3 = por %p74_p2, %p73_p1 }
   0xb   : > { %p28_p4 = scmp.ge.s32.totalorder %s749_s17, 2  ;;  %p80_p6 = scmp.eq.s32.totalorder %s357_s15, 3 }
   0xc   : > { %p360_p7 = scmp.ge.s32.totalorder %s536_s13, 1  ;;  %p112_p9 = scmp.lt.s32.totalorder %s536_s13, 5 }
   0xd   : > { %s751_s17 = smov (%p28_p4, %s749_s17), 0  ;;  %p609_p8 = por %p80_p6, %p79_p5 }
   0xe   : > { %s58_s21 = ssub.s32 %s532_s12, %s751_s17  ;;  %s63_s22 = sadd.s32 1, %s516_s8 }
   0xf   : > { %s60_s23 = sor.u32 %s59_s18, %s58_s21  ;;  %p113_p10 = pnand %p360_p7, %p112_p9 }
  0x10   : > { %p61_p11 = scmp.eq.s32.totalorder %s60_s23, 0  ;;  %s362_s25 = sshll.u32 (!%p113_p10), %s520_s9, 3  ;;  %vm164_vm0 = vcmask (!%p113_p10), 31744   ;;  %vm255_vm1 = vcmask (!%p113_p10), 1040384   ;;  %vm257_vm2 = vcmask (!%p113_p10), 25600  }
  0x11   : > { %116 = sbr.rel (%p113_p10) target bundleno = 92 (0x5c), region = 24  ;;  %p138_p12 = scmp.lt.s32.totalorder (!%p113_p10), %s524_s10, 1 }
  0x12   : > { %s618_s24 = scalar_select %p61_p11, %s516_s8, %s63_s22  }
  0x13   : > { %p140_p13 = scmp.lt.s32.totalorder (!%p113_p10), %s362_s25, 15  ;;  %s134_s5 = sand.u32 (!%p113_p10), 1, %s512_s7  }
  0x14   : > { %s361_s14 = sshll.u32 (!%p113_p10), %s134_s5, 1  ;;  %s367_s15 = sshll.u32 (!%p113_p10), %s524_s10, 1 }
  0x15   : > { %s271_s18 = sadd.s32 (!%p113_p10), %s520_s9, %s367_s15  ;;  %s136_s22 = scalar_lea.vmem (!%p113_p10), [#allocation2], %s361_s14 }
  0x16   : > { %s368_s21 = sshll.u32 (!%p113_p10), %s271_s18, 5  ;;  %s275_s23 = sshll.u32 (!%p113_p10), %s136_s22, 4  ;;  %s684_s23 = int_to_ptr.vmem [resolvable:$true] %s275_s23 }
  0x17   : > { %s260_s9 = scalar_lea.sflag (!%p113_p10), [#allocation3], %s134_s5 }
  0x18   : > { %s139_s26 = scalar_select %p138_p12, %s524_s10, 1 }
  0x19   : > { %s753_s25 = smov (!%p140_p13, %s362_s25), 15  ;;  %s442_s10 = scalar_lea.vmem %s684_s23, 32 }
  0x1a   : > { %s364_s27 = sshll.u32 %s139_s26, 5  ;;  %s363_s28 = sshll.u32 %s753_s25, 1 }
  0x1b   : > { %s144_s29 = sadd.s32 %s364_s27, %s363_s28  ;;  %s682_s27 = scalar_lea.hbm %s736_s1, %s368_s21 }
  0x1c   : > { %s365_s30 = sshll.u32 %s144_s29, 3  ;;  %p443_p0 = scmp.ne.s32.totalorder %s684_s23, %s442_s10 }
  0x1d   : > { %s626_s4 = scalar_lea.vmem %s735_s0, %s365_s30  ;;  %s538_s28 = smov [#allocation2]  }
  0x1e   : > { %v148_v0 = vld [vmem:[%s626_s4] sm:$0xff]  ;;  %v149_v1 = vld [vmem:[%s626_s4 + $0x8] sm:$0xff]  ;;  %v150_v2 = vld [vmem:[%s626_s4 + $0x10] sm:$0xff]  ;;  %p444_p1 = pnand %p443_p0, %p600_p3  ;;  %s446_s29 = sshll.u32 %s538_s28, 4  ;;  %s447_s29 = int_to_ptr.vmem [resolvable:$false] %s446_s29 }
  0x1f   : > { %v165_v3 = vsel %vm164_vm0, %v148_v0, 0.0  ;;  %v166_v4 = vsel %vm164_vm0, %v149_v1, 0.0  ;;  %v168_v5 = vsel %vm164_vm0, %v150_v2, 0.0  ;;  %v151_v6 = vld [vmem:[%s626_s4 + $0x18] sm:$0xff]  ;;  %v152_v9 = vld [vmem:[%s626_s4 + $0x20] sm:$0xff]  ;;  %v153_v12 = vld [vmem:[%s626_s4 + $0x28] sm:$0xff]  ;;  %v202_v14 = vmul.f32 %v148_v0, %v148_v0  ;;  %p449_p4 = scmp.lt.s32.totalorder %s684_s23, %s447_s29 }
  0x20   : > { %v167_v7 = vadd.f32 %v166_v4, %v165_v3  ;;  %v170_v8 = vsel %vm164_vm0, %v151_v6, 0.0  ;;  %v172_v11 = vsel %vm164_vm0, %v152_v9, 0.0  ;;  %v203_v15 = vmul.f32 %v149_v1, %v149_v1  ;;  %v154_v18 = vld [vmem:[%s626_s4 + $0x30] sm:$0xff]  ;;  %v155_v23 = vld [vmem:[%s626_s4 + $0x38] sm:$0xff]  ;;  %v156_v30 = vld [vmem:[%s626_s4 + $0x40] sm:$0xff]  ;;  %p445_p2 = pneg %p444_p1  ;;  %s448_s30 = scalar_lea.vmem %s447_s29, 64 }
  0x21   : > { %v204_v16 = vmul.f32 %v150_v2, %v150_v2  ;;  %v174_v17 = vsel %vm164_vm0, %v153_v12, 0.0  ;;  %v205_v20 = vmul.f32 %v151_v6, %v151_v6  ;;  %v176_v21 = vsel %vm164_vm0, %v154_v18, 0.0  ;;  %v157_v36 = vld [vmem:[%s626_s4 + $0x48] sm:$0xff]  ;;  %v158_v42 = vld [vmem:[%s626_s4 + $0x50] sm:$0xff]  ;;  %v159_v48 = vld [vmem:[%s626_s4 + $0x58] sm:$0xff]  ;;  %p450_p5 = scmp.lt.s32.totalorder %s448_s30, %s442_s10 }
  0x22   : > { %v169_v10 = vadd.f32 %v168_v5, %v167_v7  ;;  %v206_v22 = vmul.f32 %v152_v9, %v152_v9  ;;  %v218_v25 = vsel %vm164_vm0, %v202_v14, 0.0  ;;  %v219_v26 = vsel %vm164_vm0, %v203_v15, 0.0  ;;  %v160_v54 = vld [vmem:[%s626_s4 + $0x60] sm:$0xff]  ;;  %v161_v60 = vld [vmem:[%s626_s4 + $0x68] sm:$0xff]  ;;  %v162_v2 = vld [vmem:[%s626_s4 + $0x70] sm:$0xff] }
  0x23   : > { %v221_v27 = vsel %vm164_vm0, %v204_v16, 0.0  ;;  %v178_v28 = vsel %vm164_vm0, %v155_v23, 0.0  ;;  %v220_v29 = vadd.f32 %v219_v26, %v218_v25  ;;  %v207_v32 = vmul.f32 %v153_v12, %v153_v12  ;;  %p451_p6 = por %p450_p5, %p449_p4 }
  0x24   : > { %v171_v13 = vadd.f32 %v170_v8, %v169_v10  ;;  %v223_v33 = vsel %vm164_vm0, %v205_v20, 0.0  ;;  %v180_v34 = vsel %vm164_vm0, %v156_v30, 0.0  ;;  %v208_v38 = vmul.f32 %v154_v18, %v154_v18  ;;  %v163_v8 = vld [vmem:[%s626_s4 + $0x78] sm:$0xff] }
  0x25   : > { %v222_v35 = vadd.f32 %v221_v27, %v220_v29  ;;  %v225_v39 = vsel %vm164_vm0, %v206_v22, 0.0  ;;  %v182_v40 = vsel %vm164_vm0, %v157_v36, 0.0  ;;  %v209_v44 = vmul.f32 %v155_v23, %v155_v23  ;;  %p452_p7 = pnand %p451_p6, %p445_p2 }
  0x26   : > { %v173_v19 = vadd.f32 %v172_v11, %v171_v13  ;;  %v227_v45 = vsel %vm164_vm0, %v207_v32, 0.0  ;;  %v184_v46 = vsel %vm164_vm0, %v158_v42, 0.0  ;;  %v210_v50 = vmul.f32 %v156_v30, %v156_v30 }
  0x27   : > { %v224_v41 = vadd.f32 %v223_v33, %v222_v35  ;;  %v229_v51 = vsel %vm164_vm0, %v208_v38, 0.0  ;;  %v186_v52 = vsel %vm164_vm0, %v159_v48, 0.0  ;;  %v211_v56 = vmul.f32 %v157_v36, %v157_v36 }
  0x28   : > { %v175_v24 = vadd.f32 %v174_v17, %v173_v19  ;;  %v231_v57 = vsel %vm164_vm0, %v209_v44, 0.0  ;;  %v188_v58 = vsel %vm164_vm0, %v160_v54, 0.0  ;;  %v212_v62 = vmul.f32 %v158_v42, %v158_v42 }
  0x29   : > { %v226_v47 = vadd.f32 %v225_v39, %v224_v41  ;;  %v233_v63 = vsel %vm164_vm0, %v210_v50, 0.0  ;;  %v190_v0 = vsel %vm164_vm0, %v161_v60, 0.0  ;;  %v213_v4 = vmul.f32 %v159_v48, %v159_v48 }
  0x2a   : > { %v177_v31 = vadd.f32 %v176_v21, %v175_v24  ;;  %v235_v5 = vsel %vm164_vm0, %v211_v56, 0.0  ;;  %v192_v6 = vsel %vm164_vm0, %v162_v2, 0.0  ;;  %v214_v10 = vmul.f32 %v160_v54, %v160_v54 }
  0x2b   : > { %v228_v53 = vadd.f32 %v227_v45, %v226_v47  ;;  %v237_v11 = vsel %vm164_vm0, %v212_v62, 0.0  ;;  %v194_v12 = vsel %vm164_vm0, %v163_v8, 0.0  ;;  %v215_v15 = vmul.f32 %v161_v60, %v161_v60 }
  0x2c   : > { %v179_v37 = vadd.f32 %v178_v28, %v177_v31  ;;  %v239_v16 = vsel %vm164_vm0, %v213_v4, 0.0  ;;  %v216_v19 = vmul.f32 %v162_v2, %v162_v2  ;;  %v241_v20 = vsel %vm164_vm0, %v214_v10, 0.0 }
  0x2d   : > { %v230_v59 = vadd.f32 %v229_v51, %v228_v53  ;;  %v217_v23 = vmul.f32 %v163_v8, %v163_v8  ;;  %v243_v24 = vsel %vm164_vm0, %v215_v15, 0.0 }
  0x2e   : > { %v181_v43 = vadd.f32 %v180_v34, %v179_v37  ;;  %v245_v27 = vsel %vm164_vm0, %v216_v19, 0.0 }
  0x2f   : > { %v232_v1 = vadd.f32 %v231_v57, %v230_v59  ;;  %v247_v29 = vsel %vm164_vm0, %v217_v23, 0.0 }
  0x30   : > { %v183_v49 = vadd.f32 %v182_v40, %v181_v43 }
  0x31   : > { %v234_v7 = vadd.f32 %v233_v63, %v232_v1 }
  0x32   : > { %v185_v55 = vadd.f32 %v184_v46, %v183_v49 }
  0x33   : > { %v236_v13 = vadd.f32 %v235_v5, %v234_v7 }
  0x34   : > { %v187_v61 = vadd.f32 %v186_v52, %v185_v55 }
  0x35   : > { %v238_v17 = vadd.f32 %v237_v11, %v236_v13 }
  0x36   : > { %v189_v3 = vadd.f32 %v188_v58, %v187_v61 }
  0x37   : > { %v240_v21 = vadd.f32 %v239_v16, %v238_v17 }
  0x38   : > { %v191_v9 = vadd.f32 %v190_v0, %v189_v3 }
  0x39   : > { %v242_v25 = vadd.f32 %v241_v20, %v240_v21 }
  0x3a   : > { %v193_v14 = vadd.f32 %v192_v6, %v191_v9 }
  0x3b   : > { %v244_v28 = vadd.f32 %v243_v24, %v242_v25 }
  0x3c   : > { %v195_v18 = vadd.f32 %v194_v12, %v193_v14 }
  0x3d   : > { %v246_v31 = vadd.f32 %v245_v27, %v244_v28 }
  0x3e   : > { %v196_v22 = vrot.slane %v195_v18, 4 }
  0x3f   : > { %v248_v32 = vadd.f32 %v247_v29, %v246_v31 }
  0x40   : > { %v197_v26 = vadd.f32 %v196_v22, %v195_v18 }
  0x41   : > { %v249_v34 = vrot.slane %v248_v32, 4 }
  0x42   : > { %v198_v30 = vrot.slane %v197_v26, 2 }
  0x43   : > { %v250_v35 = vadd.f32 %v249_v34, %v248_v32 }
  0x44   : > { %v199_v33 = vadd.f32 %v198_v30, %v197_v26 }
  0x45   : > { %v251_v37 = vrot.slane %v250_v35, 2 }
  0x46   : > { %v200_v36 = vrot.slane %v199_v33, 1 }
  0x47   : > { %v252_v38 = vadd.f32 %v251_v37, %v250_v35 }
  0x48   : > { %v201_v39 = vadd.f32 %v200_v36, %v199_v33 }
  0x49   : > { %v253_v40 = vrot.slane %v252_v38, 1 }
  0x4b   : > { %v254_v41 = vadd.f32 %v253_v40, %v252_v38 }
  0x4d   : > { %v256_v42 = vsel %vm255_vm1, %v201_v39, %v254_v41 }
  0x4e   : > { %258 = vst.msk [vmem:[%s136_s22] sm:$0x3] %vm257_vm2, %v256_v42 }
  0x4f   : > { %455 = shalt.err (!%p452_p7)
}
  0x50   : > { %s456_s2 = scalar_lea.hbm %s682_s27, 32  ;;  %s460_s5 = scalar_lea.hbm %s736_s1, 128 }
  0x51   : > { %p457_p9 = scmp.ne.s32.totalorder %s682_s27, %s456_s2  ;;  %p461_p12 = scmp.lt.u32.totalorder %s682_s27, %s736_s1 }
  0x52   : > { %p462_p13 = scmp.lt.u32.totalorder %s460_s5, %s456_s2  ;;  %p464_p1 = scmp.lt.u32.totalorder %s456_s2, %s682_s27 }
  0x53   : > { %p458_p10 = pnand %p457_p9, %p600_p3 }
  0x54   : > { %p463_p0 = por %p462_p13, %p461_p12 }
  0x55   : > { %p459_p11 = pneg %p458_p10 }
  0x56   : > { %p465_p2 = por %p464_p1, %p463_p0 }
  0x58   : > { %p466_p4 = pnand %p465_p2, %p459_p11 }
  0x5a   : > { %469 = shalt.err (!%p466_p4)
}
  0x5b   : > { %371 = dma.vmem_to_hbm [thread:$0]  (%p600_p3), %s684_s23, 32, %s682_s27, %s260_s9  }
  0x5c PF: > { %p377_p5 = scmp.ge.s32.totalorder %s536_s13, 2  ;;  %s287_s18 = sand.u32 1, %s508_s6  }
  0x5d   : > { %s288_s21 = scalar_lea.sflag [#allocation3], %s287_s18 }
  0x5e   : > { %p374_p6 = pnand %p377_p5, %p609_p8 }
  0x60   : > { %503 = dma.done.wait (!%p374_p6), %s288_s21, 32  }
  0x61   : > { %505 = vsyncadd (!%p374_p6), %s288_s21, 4294967264  ;;  %s14_s13 = sadd.s32 1, %s536_s13   ;;  %s739_s6 = smov %s512_s7 }
  0x62   : > { %p11_p7 = scmp.ge.s32.totalorder %s14_s13, 6   ;;  %s740_s7 = smov %s516_s8 }
  0x63   : > { %s741_s8 = smov %s618_s24  ;;  %s742_s9 = smov %s528_s11 }
  0x64   : > { %s743_s10 = smov %s532_s12  ;;  %s744_s11 = smov %s747_s16 }
  0x65   : > { %s745_s12 = smov %s751_s17  ;;  %13 = sbr.rel (!%p11_p7) target bundleno = 5 (0x5), region = 59 }
  0x6c   :  { %293 = vsyncpa [#allocation3], 1 }
  0x6d   :  { %295 = vsyncpa [#allocation3 + $0x1], 1 }

</bundles_post_ra>
